<compile_context>
chip_gen: v7x
topology: tpu7x:2x2x1
jax: 0.10.0
libtpu: 0.0.40
codegen_flags: <defaults>
</compile_context>

<pallas_src>
import math

import jax
import jax.numpy as jnp
import numpy as np
from jax.experimental import pallas as pl
from jax.experimental.pallas import tpu as pltpu

LANES = 128                               # TPU lane width (last dim of a vreg)
_TARGET_BLOCK_BYTES = 4 * 1024 * 1024     # ~4 MiB output block per grid step
_MAX_PACKED_WIDTH = 4096                  # cap on lcm(D, 128) for the packed path
_MiB = 1024 * 1024


def _round_up(x, m):
    return -(-x // m) * m


def _pick_row_tile(n_rows, max_rows):
    """Row tile: multiple of 8 (or the full dim), <= max_rows, and chosen so the
    grid has >= 2 blocks when possible (v7x: 2 TensorCores share the grid)."""
    if n_rows <= 8:
        return n_rows                       # single block == full dim (layout-legal)
    half = _round_up(-(-n_rows // 2), 8)    # aim for at least 2 grid blocks
    return max(8, min(max_rows, half))


# ----------------------------------------------------------------------------
# Kernels
# ----------------------------------------------------------------------------
def _packed_kernel(t_ref, ew_ref, o_ref):
    # t_ref : (tile, pack)  timestamps, `pack` logical rows per lane-dense row
    # ew_ref: (pack, W)     selector with weights folded in: ew[p, p*D + d] = w[d]
    # o_ref : (tile, W)     lane-dense packed output, W = lcm(D, 128)
    # precision=HIGHEST is required: DEFAULT would truncate the f32 timestamps
    # to bf16 inside the MXU.  The extra passes ride the idle vex slot (free).
    tw = jnp.dot(t_ref[...], ew_ref[...],
                 preferred_element_type=jnp.float32,
                 precision=jax.lax.Precision.HIGHEST)
    o_ref[...] = jnp.cos(tw).astype(o_ref.dtype)


def _packed_bias_kernel(t_ref, ew_ref, b_ref, o_ref):
    tw = jnp.dot(t_ref[...], ew_ref[...],
                 preferred_element_type=jnp.float32,
                 precision=jax.lax.Precision.HIGHEST)
    o_ref[...] = jnp.cos(tw + b_ref[...]).astype(o_ref.dtype)


def _plain_kernel(t_ref, w_ref, o_ref):
    # Fallback (D >= 128 or huge lcm): broadcast (tile,1) * (1, tile_d).
    o_ref[...] = jnp.cos(t_ref[...] * w_ref[...]).astype(o_ref.dtype)


def _plain_bias_kernel(t_ref, w_ref, b_ref, o_ref):
    o_ref[...] = jnp.cos(t_ref[...] * w_ref[...] + b_ref[...]).astype(o_ref.dtype)


# ----------------------------------------------------------------------------
# Wrappers
# ----------------------------------------------------------------------------
def _compiler_params(n_grid_dims, vmem_bytes):
    vmem = int(min(max(16 * _MiB, vmem_bytes + 2 * _MiB), 56 * _MiB))
    return pltpu.CompilerParams(
        dimension_semantics=("parallel",) * n_grid_dims,
        vmem_limit_bytes=vmem,
    )


def _time_encode_packed(t_flat, w, bias, D, tile_rows, out_dtype):
    """D < 128: lane-dense packed output of width W = lcm(D, 128)."""
    N = int(t_flat.shape[0])
    W = (D * LANES) // math.gcd(D, LANES)     # lcm(D, 128), multiple of 128
    pack = W // D                              # rows packed per output row (<=128)
    n_pack = -(-N // pack)

    # Pad t only to a multiple of `pack` (< pack extra scalars); the grid
    # boundary block handles any remaining ragged rows via masked stores.
    n_flat = n_pack * pack
    if n_flat != N:
        t_flat = jnp.pad(t_flat, (0, n_flat - N))
    t2 = t_flat.reshape(n_pack, pack)

    # Selector with weights folded in: ew[p, p*D + d] = w[d].  dot(t2, ew) then
    # produces t*w directly, moving the per-element multiply off the VALU.
    lane = jnp.arange(W, dtype=jnp.int32)
    row = jnp.arange(pack, dtype=jnp.int32)[:, None]
    w_tiled = jnp.tile(w.astype(jnp.float32), pack)            # (W,), w[j % D]
    ew = jnp.where(lane[None, :] // D == row, w_tiled[None, :], 0.0)

    # Row tile: ~4 MiB output blocks, multiple of 8, >=2 grid blocks if possible.
    max_rows = max(8, (_TARGET_BLOCK_BYTES // (W * 4)) // 8 * 8)
    if tile_rows is not None:
        max_rows = min(max_rows, max(8, (tile_rows // 8) * 8))
    tile = _pick_row_tile(n_pack, max_rows)
    grid = (pl.cdiv(n_pack, tile),)

    args = [t2, ew]
    in_specs = [
        pl.BlockSpec((tile, pack), lambda i: (i, 0)),
        pl.BlockSpec((pack, W), lambda i: (0, 0)),
    ]
    kernel = _packed_kernel
    if bias is not None:
        b_tiled = jnp.tile(bias.astype(jnp.float32), pack).reshape(1, W)
        args.append(b_tiled)
        in_specs.append(pl.BlockSpec((1, W), lambda i: (0, 0)))
        kernel = _packed_bias_kernel

    out_isize = jnp.dtype(out_dtype).itemsize
    vmem_bytes = (2 * tile * W * out_isize          # double-buffered output block
                  + 2 * tile * LANES * 4            # t block (lane-padded to 128)
                  + 2 * _round_up(pack, 8) * W * 4  # selector
                  + (2 * 8 * W * 4 if bias is not None else 0))
    cost = pl.CostEstimate(
        flops=int(2 * n_pack * pack * W),           # selector matmul (includes t*w)
        transcendentals=int(n_pack * W),            # cos
        bytes_accessed=int(4 * (n_pack * pack + pack * W) + out_isize * n_pack * W),
    )

    out = pl.pallas_call(
        kernel,
        out_shape=jax.ShapeDtypeStruct((n_pack, W), out_dtype),
        grid=grid,
        in_specs=in_specs,
        out_specs=pl.BlockSpec((tile, W), lambda i: (i, 0)),
        compiler_params=_compiler_params(1, vmem_bytes),
        cost_estimate=cost,
    )(*args)

    # (n_pack, W) row-major is element-identical to (n_flat, D) row-major.
    out2d = out.reshape(n_flat, D)
    if n_flat != N:                                  # trim only when padding occurred
        out2d = out2d[:N]
    return out2d


def _time_encode_plain(t_flat, w, bias, D, tile_rows, out_dtype):
    """Fallback (D >= 128 or lcm too wide): 2-D grid over rows and D."""
    N = int(t_flat.shape[0])
    t2 = t_flat.reshape(N, 1)

    # Tile D as well so large D never forces a single huge output block
    # (v7x has only 64 MiB VMEM and a 32 MiB scoped default).
    tile_d = D if D <= 512 else 512                  # 512 is a multiple of 128
    grid_d = pl.cdiv(D, tile_d)

    max_rows = max(8, (_TARGET_BLOCK_BYTES // (tile_d * 4)) // 8 * 8)
    if tile_rows is not None:
        max_rows = min(max_rows, max(8, (tile_rows // 8) * 8))
    tile_r = _pick_row_tile(N, max_rows)
    grid_r = pl.cdiv(N, tile_r)

    w2 = w.astype(jnp.float32).reshape(1, D)
    args = [t2, w2]
    in_specs = [
        pl.BlockSpec((tile_r, 1), lambda i, j: (i, 0)),
        pl.BlockSpec((1, tile_d), lambda i, j: (0, j)),
    ]
    kernel = _plain_kernel
    if bias is not None:
        args.append(bias.astype(jnp.float32).reshape(1, D))
        in_specs.append(pl.BlockSpec((1, tile_d), lambda i, j: (0, j)))
        kernel = _plain_bias_kernel

    out_isize = jnp.dtype(out_dtype).itemsize
    vmem_bytes = (2 * tile_r * tile_d * out_isize
                  + 2 * tile_r * LANES * 4
                  + 2 * 8 * tile_d * 4 * (2 if bias is not None else 1))
    cost = pl.CostEstimate(
        flops=int(2 * N * D),
        transcendentals=int(N * D),
        bytes_accessed=int(4 * (N + D) + out_isize * N * D),
    )

    out = pl.pallas_call(
        kernel,
        out_shape=jax.ShapeDtypeStruct((N, D), out_dtype),
        grid=(grid_r, grid_d),
        in_specs=in_specs,
        out_specs=pl.BlockSpec((tile_r, tile_d), lambda i, j: (i, j)),
        compiler_params=_compiler_params(2, vmem_bytes),
        cost_estimate=cost,
    )(*args)
    return out


def time_encode(t, weight, bias=None, *, tile_rows=None, out_dtype=jnp.float32):
    """t: (B, S) f32; weight: (D,) f32; optional bias: (D,) f32 -> (B, S, D).

    bias=None skips the add entirely (the module initializes bias to zeros, so
    cos(t*w + 0) == cos(t*w)); pass a bias array to reproduce a trained bias.
    out_dtype=jnp.bfloat16 halves output HBM traffic (deviates from the f32
    PyTorch reference; keep the default for parity).
    """
    B, S = t.shape
    D = int(weight.shape[0])
    N = B * S
    t_flat = t.reshape(N).astype(jnp.float32)
    w = weight.astype(jnp.float32)

    W = (D * LANES) // math.gcd(D, LANES)
    if D < LANES and W <= _MAX_PACKED_WIDTH:
        out2d = _time_encode_packed(t_flat, w, bias, D, tile_rows, out_dtype)
    else:
        out2d = _time_encode_plain(t_flat, w, bias, D, tile_rows, out_dtype)
    return out2d.reshape(B, S, D)


def make_params(dimension):
    # Deterministic init matching the PyTorch module's __init__.
    w = (1.0 / 10 ** np.linspace(0, 9, dimension)).astype(np.float32)  # (D,)
    b = np.zeros(dimension, dtype=np.float32)                          # (D,)
    return jnp.asarray(w), jnp.asarray(b)


if __name__ == "__main__":
    # NOTE: these are tiny correctness shapes (grid of 1-2 blocks); benchmark at
    # production N = B*S with min-of-N xprof timings, not with this harness.
    key = jax.random.PRNGKey(0)
    configs = [
        (2, 8, 32),    # packed path, W = 128
        (3, 5, 100),   # packed path, W = 3200 (realistic TGN D), ragged N
        (2, 8, 256),   # plain path (D >= 128), 2-D grid
    ]
    for (B, S, D) in configs:
        key, sub = jax.random.split(key)
        t = jax.random.uniform(sub, (B, S), dtype=jnp.float32) * 100.0  # timestamps
        w, b = make_params(D)

        # Bias is identically zero at init -> omitted from the hot path.
        out = jax.block_until_ready(time_encode(t, w))
        assert out.shape == (B, S, D)

        # Reference (same math as torch.cos(self.w(t.unsqueeze(2)))).
        ref = jnp.cos(t[:, :, None] * w[None, None, :] + b[None, None, :])
        np.testing.assert_allclose(np.asarray(out), np.asarray(ref),
                                   rtol=1e-5, atol=5e-5)

        # Also exercise the optional explicit-bias path once.
        out_b = jax.block_until_ready(time_encode(t, w, b))
        np.testing.assert_allclose(np.asarray(out_b), np.asarray(ref),
                                   rtol=1e-5, atol=5e-5)

    print("KERNEL_OK")
</pallas_src>

<mosaic_0001>
module attributes {stable_mosaic.version = 11 : i64} {
  func.func @_packed_kernel(%arg0: i32, %arg1: memref<4x4xf32, #tpu.memory_space<vmem>>, %arg2: memref<4x128xf32, #tpu.memory_space<vmem>>, %arg3: memref<4x128xf32, #tpu.memory_space<vmem>>) attributes {dimension_semantics = [#tpu.dimension_semantics<parallel>], iteration_bounds = array<i64: 1>, scalar_prefetch = 0 : i64, scratch_operands = 0 : i64, tpu.core_type = #tpu.core_type<tc>, window_params = [{transform_indices = @transform_0, window_bounds = array<i64: 4, 4>}, {pipeline_mode = #tpu.pipeline_mode<synchronous>, transform_indices = @transform_1, window_bounds = array<i64: 4, 128>}, {transform_indices = @transform_2, window_bounds = array<i64: 4, 128>}]} {
    %c0 = arith.constant 0 : index
    %c0_0 = arith.constant 0 : index
    %0 = vector.load %arg1[%c0, %c0_0] : memref<4x4xf32, #tpu.memory_space<vmem>>, vector<4x4xf32>
    %c0_1 = arith.constant 0 : index
    %c0_2 = arith.constant 0 : index
    %1 = vector.load %arg2[%c0_1, %c0_2] : memref<4x128xf32, #tpu.memory_space<vmem>>, vector<4x128xf32>
    %cst = arith.constant dense<0.000000e+00> : vector<4x128xf32>
    %2 = tpu.matmul %0, %1, %cst {dimension_numbers = #tpu.dot_dimension_numbers<[1], [0], [0], [1], [0, 0, 1, 1], [], []>, precision = #tpu.contract_precision<fp32>} : vector<4x4xf32>, vector<4x128xf32>, vector<4x128xf32> -> vector<4x128xf32>
    %3 = math.cos %2 : vector<4x128xf32>
    %c0_3 = arith.constant 0 : index
    %c0_4 = arith.constant 0 : index
    %4 = vector.load %arg3[%c0_3, %c0_4] : memref<4x128xf32, #tpu.memory_space<vmem>>, vector<4x128xf32>
    tpu.vector_store %arg3[%c0_3, %c0_4], %3 {strides = array<i32>} : memref<4x128xf32, #tpu.memory_space<vmem>>, vector<4x128xf32>,
    return
  }
  func.func @transform_0(%arg0: i32) -> (i32, i32) {
    %c0_i32 = arith.constant 0 : i32
    %c0_i32_0 = arith.constant 0 : i32
    return %arg0, %c0_i32 : i32, i32
  }
  func.func @transform_1(%arg0: i32) -> (i32, i32) {
    %c0_i32 = arith.constant 0 : i32
    %c0_i32_0 = arith.constant 0 : i32
    %c0_i32_1 = arith.constant 0 : i32
    return %c0_i32, %c0_i32_0 : i32, i32
  }
  func.func @transform_2(%arg0: i32) -> (i32, i32) {
    %c0_i32 = arith.constant 0 : i32
    %c0_i32_0 = arith.constant 0 : i32
    return %arg0, %c0_i32 : i32, i32
  }
}

</mosaic_0001>

<bundles_post_ra>
// kernel: tpu_custom_call.1
= control target key start
LH: loop header
LB: loop body
LE: loop exit
PB: predicated region body
PF: predicated region fallthrough
CT: control target
= control target key end

     0   :  { %7 = vsyncpa [#allocation3], 0  ;;  %s847_s0 = inlined_call_operand.hbm [shape: f32[4,4], index: 0, kind: input, shape index: {}]   ;;  %s848_s1 = inlined_call_operand.hbm [shape: f32[4,128], index: 1, kind: input, shape index: {}]   ;;  %s849_s2 = inlined_call_operand.hbm [shape: f32[4,128], index: 2, kind: output, shape index: {}]  }
   0x1   :  { %8 = vsyncpa [#allocation6], 0 }
   0x2   :  { %9 = vsyncpa [#allocation4], 0  ;;  %s758_s9 = smov [#allocation2]   ;;  %s759_s11 = smov [#allocation5]  }
   0x3   :  { %s16_s10 = sshll.u32 %s758_s9, 4  ;;  %s26_s12 = sshll.u32 %s759_s11, 4  ;;  %s17_s10 = int_to_ptr.vmem [resolvable:$true] %s16_s10  ;;  %s27_s12 = int_to_ptr.vmem [resolvable:$true] %s26_s12 }
   0x4   :  { %s686_s15 = scalar_lea.hbm %s847_s0, 64 }
   0x5   :  { %p687_p0 = scmp.ne.s32.totalorder %s847_s0, %s686_s15  ;;  %p690_p1 = scmp.lt.u32.totalorder %s686_s15, %s847_s0 }
   0x7   :  { %p692_p2 = pnand %p690_p1, %p687_p0 }
   0x9   :  { %695 = shalt.err (!%p692_p2)
}
   0xa   :  { %s696_s20 = scalar_lea.vmem %s17_s10, 64  ;;  %p701_p4 = scmp.lt.s32.totalorder %s17_s10, %s17_s10 }
   0xb   :  { %p697_p3 = scmp.ne.s32.totalorder %s17_s10, %s696_s20  ;;  %p702_p5 = scmp.lt.s32.totalorder %s696_s20, %s696_s20 }
   0xd   :  { %p703_p6 = por %p702_p5, %p701_p4 }
   0xf   :  { %p704_p7 = pnand %p703_p6, %p697_p3 }
  0x11   :  { %707 = shalt.err (!%p704_p7)
}
  0x12   :  { %19 = dma.hbm_to_vmem [thread:$0]  %s847_s0, 64, %s17_s10, [#allocation3]  }
  0x13   :  { %s708_s25 = scalar_lea.hbm %s848_s1, 64 }
  0x14   :  { %p709_p8 = scmp.ne.s32.totalorder %s848_s1, %s708_s25  ;;  %p712_p9 = scmp.lt.u32.totalorder %s708_s25, %s848_s1 }
  0x16   :  { %p714_p10 = pnand %p712_p9, %p709_p8 }
  0x18   :  { %717 = shalt.err (!%p714_p10)
}
  0x19   :  { %s718_s30 = scalar_lea.vmem %s27_s12, 64  ;;  %p723_p12 = scmp.lt.s32.totalorder %s27_s12, %s27_s12 }
  0x1a   :  { %p719_p11 = scmp.ne.s32.totalorder %s27_s12, %s718_s30  ;;  %p724_p13 = scmp.lt.s32.totalorder %s718_s30, %s718_s30 }
  0x1c   :  { %p725_p0 = por %p724_p13, %p723_p12 }
  0x1e   :  { %p726_p1 = pnand %p725_p0, %p719_p11 }
  0x20   :  { %729 = shalt.err (!%p726_p1)
}
  0x21   :  { %29 = dma.hbm_to_vmem [thread:$0]  %s848_s1, 64, %s27_s12, [#allocation6]  }
  0x22   :  { %752 = dma.done.wait [#allocation3], 64  }
  0x23   :  { %753 = vsyncadd [#allocation3], 4294967232 }
  0x24   :  { %754 = dma.done.wait [#allocation6], 64  }
  0x25   :  { %755 = vsyncadd [#allocation6], 4294967232  ;;  %v760_v0 = vmov 0.0   ;;  %vm761_vm0 = vmmov 0   ;;  %vm42_vm1 = vcmask 1043456   ;;  %vm38_vm2 = vcmask 31744  }
  0x26   :  { %643 = vmatprep.subr.mxu0 %v760_v0  ;;  %645 = vmatprep.mubr.msk.f32.mxu0 %vm761_vm0, %v760_v0  ;;  %v37_v1 = vld [vmem:[#allocation5] sm:$0xf]  ;;  %v36_v2 = vld [vmem:[#allocation2] sm:$0xf]  ;;  %v762_v30 = vmov 683565275  }
  0x27   :  { %628 = vmatprep.subr.mxu1 %v760_v0  ;;  %630 = vmatprep.mubr.msk.f32.mxu1 %vm761_vm0, %v760_v0  ;;  %v44_v3 = vsel %vm42_vm1, %v37_v1, 0  ;;  %v40_v4 = vsel %vm38_vm2, %v36_v2, 0  ;;  %v763_v32 = vmov 2475754826   ;;  %v764_v35 = vmov 2131351028  }
  0x28   :  { %v47_v5 = vand.u32 4294901760, %v44_v3  ;;  %v112_v6 = vand.u32 4294901760, %v40_v4  ;;  %v765_v38 = vmov 2102212464   ;;  %v766_v41 = vmov 920167782  }
  0x29   :  { %v767_v44 = vmov 1326507024   ;;  %s768_s1 = smov [#allocation7]  }
  0x2a   :  { %v124_v7 = vsub.f32 %v44_v3, %v47_v5  ;;  %644 = vmatpush3.msra.mxu0 %v47_v5  ;;  %v113_v8 = vsub.f32 %v40_v4, %v112_v6  ;;  %629 = vmatpush3.msra.mxu1 %v47_v5  ;;  %s602_s4 = sshll.u32 %s768_s1, 4  ;;  %s603_s4 = int_to_ptr.vmem [resolvable:$true] %s602_s4 }
  0x2b   :  { %633 = vmatprep.subr.mxu1 %v760_v0  ;;  %648 = vmatprep.subr.mxu0 %v760_v0  ;;  %s730_s5 = scalar_lea.vmem %s603_s4, 64  ;;  %p735_p3 = scmp.lt.s32.totalorder %s603_s4, %s603_s4 }
  0x2c   :  { %v114_v9 = vand.u32 4294901760, %v113_v8  ;;  %v125_v10 = vand.u32 4294901760, %v124_v7  ;;  %p731_p2 = scmp.ne.s32.totalorder %s603_s4, %s730_s5  ;;  %p736_p4 = scmp.lt.s32.totalorder %s730_s5, %s730_s5 }
  0x2e   :  { %646 = vmatmul.mubr.f32.vlgmr.msra.gmra.mrb[0].mxu0 %v114_v9  ;;  %v115_v11 = vsub.f32 %v113_v8, %v114_v9  ;;  %v126_v12 = vsub.f32 %v124_v7, %v125_v10  ;;  %p737_p5 = por %p736_p4, %p735_p3 }
  0x2f   :  { %649 = vmatpush3.msra.mxu0 %v125_v10  ;;  %650 = vmatprep.mubr.msk.f32.mxu0 %vm761_vm0, %v760_v0 }
  0x30   :  { %v116_v13 = vand.u32 4294901760, %v115_v11  ;;  %v127_v14 = vand.u32 4294901760, %v126_v12  ;;  %653 = vmatprep.subr.mxu0 %v760_v0  ;;  %p738_p6 = pnand %p737_p5, %p731_p2 }
  0x32   :  { %631 = vmatmul.mubr.f32.vlgmr.msra.gmra.mrb[0].mxu1 %v116_v13 }
  0x33   :  { %634 = vmatpush3.msra.mxu1 %v127_v14  ;;  %635 = vmatprep.mubr.msk.f32.mxu1 %vm761_vm0, %v760_v0 }
  0x34   :  { %638 = vmatprep.subr.mxu1 %v760_v0 }
  0x36   :  { %651 = vmatmul.mubr.f32.vlgmr.msra.gmra.mrb[0].mxu0 %v112_v6 }
  0x37   :  { %654 = vmatpush3.msra.mxu0 %v47_v5  ;;  %655 = vmatprep.mubr.msk.f32.mxu0 %vm761_vm0, %v760_v0 }
  0x3a   :  { %636 = vmatmul.mubr.f32.vlgmr.msra.gmra.mrb[0].mxu1 %v112_v6 }
  0x3b   :  { %639 = vmatpush3.msra.mxu1 %v124_v7  ;;  %640 = vmatprep.mubr.msk.f32.mxu1 %vm761_vm0, %v760_v0 }
  0x3e   :  { %656 = vmatmul.mubr.f32.vlgmr.msra.gmra.mrb[0].mxu0 %v112_v6 }
  0x42   :  { %641 = vmatmul.mubr.f32.vlgmr.msra.gmra.mrb[0].mxu1 %v113_v8 }
 0x111   :  { %v488_v15 = vpop.f32.mrb[0].mxu0 }
 0x112   :  { %v657_v16 = vpop.f32.mrb[1].mxu0 }
 0x115   :  { %v268_v17 = vpop.f32.mrb[0].mxu1 }
 0x116   :  { %v814_v18 = vadd.f32 %v488_v15, %v268_v17  ;;  %v642_v19 = vpop.f32.mrb[1].mxu1 }
 0x118   :  { %v495_v20 = vand.u32 2139095040, %v814_v18  ;;  %v492_v24 = vand.u32 2147483647, %v814_v18  ;;  %vm494_vm10 = vcmp.lt.s32.totalorder %v814_v18, 0  ;;  %vm584_vm15 = vweird.f32 %v814_v18 }
 0x11a   :  { %v496_v21 = vshrl.u32 %v495_v20, 23  ;;  %v499_v27 = vand.u32 8388607, %v492_v24  ;;  %vm493_vm11 = vcmp.le.f32.partialorder %v492_v24, 0.7853982 }
 0x11c   :  { %v612_v22 = vadd.s32 4294967169, %v496_v21  ;;  %v500_v46 = vor.u32 8388608, %v499_v27 }
 0x11e   :  { %v502_v23 = vadd.s32 1, %v612_v22  ;;  %v540_v60 = vshll.u32 %v500_v46, 8 }
 0x120   :  { %vm503_vm3 = vcmp.gt.s32.totalorder %v502_v23, 0 }
 0x121   :  { %v504_v25 = vsel %vm503_vm3, %v502_v23, 0 }
 0x122   :  { %v506_v26 = vand.u32 31, %v504_v25  ;;  %v505_v29 = vshrl.u32 %v504_v25, 5 }
 0x124   :  { %v507_v28 = vsub.s32 32, %v506_v26  ;;  %v509_v31 = vshll.u32 %v762_v30, %v506_v26  ;;  %v512_v33 = vshll.u32 %v763_v32, %v506_v26  ;;  %v515_v37 = vshll.u32 %v764_v35, %v506_v26 }
 0x125   :  { %v518_v40 = vshll.u32 %v765_v38, %v506_v26  ;;  %v521_v43 = vshll.u32 %v766_v41, %v506_v26  ;;  %vm524_vm4 = vcmp.lt.s32.totalorder %v505_v29, 1  ;;  %vm527_vm5 = vcmp.lt.s32.totalorder %v505_v29, 4 }
 0x126   :  { %v510_v34 = vshrl.u32 %v763_v32, %v507_v28  ;;  %v513_v36 = vshrl.u32 %v764_v35, %v507_v28  ;;  %v516_v39 = vshrl.u32 %v765_v38, %v507_v28  ;;  %v519_v42 = vshrl.u32 %v766_v41, %v507_v28 }
 0x127   :  { %v522_v45 = vshrl.u32 %v767_v44, %v507_v28  ;;  %v508_v55 = vshrl.u32 %v762_v30, %v507_v28  ;;  %vm526_vm6 = vcmp.lt.s32.totalorder %v505_v29, 3  ;;  %vm525_vm7 = vcmp.lt.s32.totalorder %v505_v29, 2 }
 0x128   :  { %v511_v47 = vor.u32 %v510_v34, %v509_v31  ;;  %v514_v48 = vor.u32 %v513_v36, %v512_v33  ;;  %v517_v49 = vor.u32 %v516_v39, %v515_v37  ;;  %v520_v50 = vor.u32 %v519_v42, %v518_v40 }
 0x129   :  { %v523_v51 = vor.u32 %v522_v45, %v521_v43 }
 0x12a   :  { %v529_v52 = vsel %vm527_vm5, %v517_v49, 2102212464  ;;  %v532_v53 = vsel %vm524_vm4, %v511_v47, %v514_v48  ;;  %v536_v54 = vsel %vm524_vm4, %v514_v48, %v517_v49  ;;  %v533_v56 = vsel %vm527_vm5, %v520_v50, 920167782 }
 0x12b   :  { %v537_v57 = vsel %vm527_vm5, %v523_v51, 1326507024  ;;  %v534_v58 = vsel %vm526_vm6, %v517_v49, %v533_v56  ;;  %v528_v61 = vsel %vm524_vm4, %v508_v55, %v511_v47  ;;  %v530_v62 = vsel %vm526_vm6, %v514_v48, %v529_v52 }
 0x12c   :  { %v538_v59 = vsel %vm526_vm6, %v520_v50, %v537_v57  ;;  %v535_v63 = vsel %vm525_vm7, %v532_v53, %v534_v58  ;;  %v531_v5 = vsel %vm525_vm7, %v528_v61, %v530_v62 }
 0x12d   :  { %v539_v0 = vsel %vm525_vm7, %v536_v54, %v538_v59  ;;  %v823_v3 = vmul.u32.u64.low %v540_v60, %v535_v63  ;;  %v824_v4 = vmul.u32.u64.high %v540_v60, %v535_v63, %v823_v3  ;;  %v547_v7 = vmul.u32 %v540_v60, %v531_v5 }
 0x12e   :  { %v820_v1 = vmul.u32.u64.low %v540_v60, %v539_v0  ;;  %v821_v2 = vmul.u32.u64.high %v540_v60, %v539_v0, %v820_v1 }
 0x12f   :  { %v550_v6 = vadd.s32 1, %v824_v4 }
 0x130   :  { %vm549_vm8 = vc.u32 %v821_v2, %v823_v3  ;;  %v548_v20 = vadd.s32 %v823_v3, %v821_v2 }
 0x131   :  { %v551_v8 = vsel %vm549_vm8, %v550_v6, %v824_v4 }
 0x132   :  { %v552_v9 = vadd.s32 %v551_v8, %v547_v7 }
 0x134   :  { %v553_v10 = vadd.s32 536870912, %v552_v9 }
 0x136   :  { %v554_v11 = vshrl.u32 %v553_v10, 30 }
 0x138   :  { %v555_v12 = vshll.u32 %v554_v11, 30  ;;  %v578_v35 = vsub.s32 4, %v554_v11 }
 0x13a   :  { %v556_v13 = vsub.s32 %v552_v9, %v555_v12  ;;  %v579_v37 = vsel %vm494_vm10, %v578_v35, %v554_v11 }
 0x13b   :  { %v581_v38 = vsel %vm493_vm11, 0, %v579_v37 }
 0x13c   :  { %v558_v14 = vsub.s32 0, %v556_v13  ;;  %v585_v39 = vand.u32 3, %v581_v38 }
 0x13e   :  { %v613_v15 = vmin.u32 %v558_v14, %v556_v13  ;;  %vm590_vm12 = vcmp.eq.s32.totalorder %v585_v39, 2  ;;  %vm587_vm13 = vcmp.eq.s32.totalorder %v585_v39, 0  ;;  %vm586_vm14 = vcmp.lt.s32.totalorder %v585_v39, 2 }
 0x140   :  { %v560_v16 = vclz %v613_v15 }
 0x142   :  { %v614_v17 = vadd.s32 4294967294, %v560_v16 }
 0x144   :  { %vm615_vm9 = vcmp.lt.s32.totalorder %v614_v17, 0 }
 0x145   :  { %v563_v19 = vsel %vm615_vm9, 0, %v614_v17 }
 0x146   :  { %v564_v21 = vsub.s32 32, %v563_v19  ;;  %v568_v22 = vsub.s32 4294967266, %v563_v19  ;;  %v565_v23 = vshll.u32 %v556_v13, %v563_v19 }
 0x148   :  { %v566_v25 = vshrl.u32 %v548_v20, %v564_v21  ;;  %v569_v26 = vadd.s32 127, %v568_v22 }
 0x14a   :  { %v567_v27 = vor.u32 %v566_v25, %v565_v23  ;;  %v570_v28 = vshll.u32 %v569_v26, 23 }
 0x14c   :  { %v571_v29 = vor.u32 4788187, %v570_v28  ;;  %v574_v31 = vcvt.s32.f32 %v567_v27 }
 0x14e   :  { %v572_v30 = vand.u32 2147483647, %v571_v29 }
 0x150   :  { %v575_v32 = vmul.f32 %v574_v31, %v572_v30 }
 0x152   :  { %v576_v33 = vxor.u32 2147483648, %v575_v32 }
 0x154   :  { %v577_v34 = vsel %vm494_vm10, %v576_v33, %v575_v32 }
 0x155   :  { %v580_v36 = vsel %vm493_vm11, %v814_v18, %v577_v34 }
 0x156   :  { %682 = vcosq.f32 %v580_v36 }
 0x157   :  { %684 = vsinq.f32 %v580_v36 }
 0x160   :  { %v683_v40 = vpop.eup %682 }
 0x161   :  { %v685_v41 = vpop.eup %684  ;;  %v591_v42 = vxor.u32 2147483648, %v683_v40 }
 0x162   :  { %v588_v43 = vxor.u32 2147483648, %v685_v41 }
 0x163   :  { %v592_v44 = vsel %vm590_vm12, %v591_v42, %v685_v41 }
 0x164   :  { %v589_v45 = vsel %vm587_vm13, %v683_v40, %v588_v43 }
 0x165   :  { %v593_v24 = vsel %vm586_vm14, %v589_v45, %v592_v44 }
 0x166   :  { %v594_v46 = vsel %vm584_vm15, nan, %v593_v24 }
 0x167   :  { %595 = vst [vmem:[#allocation7] sm:$0xf] %v594_v46 }
 0x168   :  { %741 = shalt.err (!%p738_p6)
}
 0x169   :  { %s742_s8 = scalar_lea.hbm %s849_s2, 64 }
 0x16a   :  { %p743_p7 = scmp.ne.s32.totalorder %s849_s2, %s742_s8  ;;  %p746_p8 = scmp.lt.u32.totalorder %s742_s8, %s849_s2 }
 0x16c   :  { %p748_p9 = pnand %p746_p8, %p743_p7 }
 0x16e   :  { %751 = shalt.err (!%p748_p9)
}
 0x16f   :  { %605 = dma.vmem_to_hbm [thread:$0]  %s603_s4, 64, %s849_s2, [#allocation4]  }
 0x170   :  { %756 = dma.done.wait [#allocation4], 64  }
 0x171   :  { %757 = vsyncadd [#allocation4], 4294967232 }
 0x172   :  { %609 = vsyncpa [#allocation3], 1 }
 0x173   :  { %610 = vsyncpa [#allocation6], 1 }
 0x174   :  { %611 = vsyncpa [#allocation4], 1 }

</bundles_post_ra>
